<compile_context>
chip_gen: v7x
topology: tpu7x:2x2x1
jax: 0.10.0
libtpu: 0.0.40
codegen_flags: <defaults>
</compile_context>

<pallas_src>
import jax
import jax.numpy as jnp
from jax.experimental import pallas as pl
from jax.experimental.pallas import tpu as pltpu

INPUT_SIZE = 100
HIDDEN_SIZES = [256, 128, 64]
FEAT_DIM = HIDDEN_SIZES[-1]        # 64
HEAD_HIDDEN = 32
W_PAD = 128                        # padded lane width of layer-3 / head intermediates / output slab
TILE_B_MAX = 1024                  # batch tile size (review: 512+ rows ~85% of HBM roofline)
BN_EPS = 1e-5

# Output slab lane layout: [0:64) features | 64 sentiment | 65 volatility | [66:69) trend | [69:128) zero
SENT_COL = FEAT_DIM                # 64
VOL_COL = FEAT_DIM + 1             # 65
TREND_COL0 = FEAT_DIM + 2          # 66
TREND_COLS = 3


def _round_up(n, m):
    return ((n + m - 1) // m) * m


def _neuro_kernel(
    x_ref,
    w1_ref, b1_ref, s1_ref, t1_ref,
    w2_ref, b2_ref, s2_ref, t2_ref,
    w3_ref, b3_ref, s3_ref, t3_ref,
    wh1_ref, bh1_ref,
    wh2_ref, bh2_ref,
    out_ref,
):
    x = x_ref[...]

    def dense(h, w_ref, b_ref):
        return jnp.dot(h, w_ref[...], preferred_element_type=jnp.float32) + b_ref[...]

    def bn(h, s_ref, t_ref):
        # eval-mode BatchNorm1d: y = h * gamma/sqrt(var+eps) + (beta - mean*gamma/sqrt(var+eps))
        return h * s_ref[...] + t_ref[...]

    # ---- feature extractor: Linear -> ReLU -> (Dropout = id, eval) -> BatchNorm ----
    h = bn(jnp.maximum(dense(x, w1_ref, b1_ref), 0.0), s1_ref, t1_ref)        # (tb, 256)
    h = bn(jnp.maximum(dense(h, w2_ref, b2_ref), 0.0), s2_ref, t2_ref)        # (tb, 128)
    feat = bn(jnp.maximum(dense(h, w3_ref, b3_ref), 0.0), s3_ref, t3_ref)     # (tb, 128), lanes 64:128 == 0

    # ---- fused heads: one (128,128) matmul + one block-diagonal (128,128) matmul ----
    hh = jnp.maximum(dense(feat, wh1_ref, bh1_ref), 0.0)                      # (tb, 128)
    z = dense(hh, wh2_ref, bh2_ref)                                           # (tb, 128), only lanes 64:69 nonzero

    col = jax.lax.broadcasted_iota(jnp.int32, z.shape, 1)
    trend_mask = (col >= TREND_COL0) & (col < TREND_COL0 + TREND_COLS)
    t_logits = jnp.where(trend_mask, z, -1e30)
    m = jnp.max(t_logits, axis=1, keepdims=True)
    e = jnp.where(trend_mask, jnp.exp(z - m), 0.0)
    soft = e / jnp.sum(e, axis=1, keepdims=True)        # exact normalization: rows sum to 1

    # Lane-dense packed slab: features in lanes <64, head activations in lanes 64..68,
    # zeros elsewhere (feat is already zero for lanes >= 64).
    slab = jnp.where(col == SENT_COL, jnp.tanh(z),
                     jnp.where(col == VOL_COL, jax.nn.sigmoid(z),
                               jnp.where(trend_mask, soft, feat)))
    out_ref[...] = slab                                  # single unmasked 128-lane store


def init_params(key):
    """Raw PyTorch-like params: Linear U(+-1/sqrt(fan_in)), fresh BatchNorm1d state."""
    raw = {}

    def linear(key, fan_in, fan_out):
        kw, kb = jax.random.split(key)
        bound = 1.0 / jnp.sqrt(float(fan_in))
        w = jax.random.uniform(kw, (fan_in, fan_out), jnp.float32, -bound, bound)
        b = jax.random.uniform(kb, (1, fan_out), jnp.float32, -bound, bound)
        return w, b

    keys = jax.random.split(key, 16)
    k = iter(keys)

    prev = INPUT_SIZE
    for li, hs in enumerate(HIDDEN_SIZES, start=1):
        raw[f"w{li}"], raw[f"b{li}"] = linear(next(k), prev, hs)
        raw[f"gamma{li}"] = jnp.ones((1, hs), jnp.float32)
        raw[f"beta{li}"] = jnp.zeros((1, hs), jnp.float32)
        raw[f"mean{li}"] = jnp.zeros((1, hs), jnp.float32)
        raw[f"var{li}"] = jnp.ones((1, hs), jnp.float32)
        prev = hs

    raw["ws1"], raw["bs1"] = linear(next(k), prev, HEAD_HIDDEN)
    raw["ws2"], raw["bs2"] = linear(next(k), HEAD_HIDDEN, 1)
    raw["wv1"], raw["bv1"] = linear(next(k), prev, HEAD_HIDDEN)
    raw["wv2"], raw["bv2"] = linear(next(k), HEAD_HIDDEN, 1)
    raw["wt1"], raw["bt1"] = linear(next(k), prev, HEAD_HIDDEN)
    raw["wt2"], raw["bt2"] = linear(next(k), HEAD_HIDDEN, 3)
    return raw


def prepare_params(raw):
    """One-time pack of the raw tensors into the 16 kernel operands (zero-padded to 128 lanes
    where needed).  No BN folding -> no positivity assumption, exact parity with the reference."""
    p = {}
    for i in (1, 2, 3):
        s = raw[f"gamma{i}"] / jnp.sqrt(raw[f"var{i}"] + BN_EPS)
        t = raw[f"beta{i}"] - raw[f"mean{i}"] * s
        if i < 3:
            p[f"w{i}"], p[f"b{i}"], p[f"s{i}"], p[f"t{i}"] = raw[f"w{i}"], raw[f"b{i}"], s, t
        else:
            # Layer 3: pad output 64 -> 128 lanes; padded lanes produce exact zeros
            # (zero W/b cols -> relu(0) = 0, then 0*1 + 0 = 0).
            p["w3"] = jnp.zeros((HIDDEN_SIZES[1], W_PAD), jnp.float32).at[:, :FEAT_DIM].set(raw["w3"])
            p["b3"] = jnp.zeros((1, W_PAD), jnp.float32).at[:, :FEAT_DIM].set(raw["b3"])
            p["s3"] = jnp.ones((1, W_PAD), jnp.float32).at[:, :FEAT_DIM].set(s)
            p["t3"] = jnp.zeros((1, W_PAD), jnp.float32).at[:, :FEAT_DIM].set(t)

    # Fused head first layers: (128, 128); rows 64:128 and cols 96:128 are zero.
    wh1 = jnp.zeros((W_PAD, W_PAD), jnp.float32)
    wh1 = wh1.at[:FEAT_DIM, 0:HEAD_HIDDEN].set(raw["ws1"])
    wh1 = wh1.at[:FEAT_DIM, HEAD_HIDDEN:2 * HEAD_HIDDEN].set(raw["wv1"])
    wh1 = wh1.at[:FEAT_DIM, 2 * HEAD_HIDDEN:3 * HEAD_HIDDEN].set(raw["wt1"])
    bh1 = jnp.zeros((1, W_PAD), jnp.float32)
    bh1 = bh1.at[:, 0:HEAD_HIDDEN].set(raw["bs1"])
    bh1 = bh1.at[:, HEAD_HIDDEN:2 * HEAD_HIDDEN].set(raw["bv1"])
    bh1 = bh1.at[:, 2 * HEAD_HIDDEN:3 * HEAD_HIDDEN].set(raw["bt1"])

    # Fused head second layers: block-diagonal into output lanes 64..68 of the slab.
    wh2 = jnp.zeros((W_PAD, W_PAD), jnp.float32)
    wh2 = wh2.at[0:HEAD_HIDDEN, SENT_COL:SENT_COL + 1].set(raw["ws2"])
    wh2 = wh2.at[HEAD_HIDDEN:2 * HEAD_HIDDEN, VOL_COL:VOL_COL + 1].set(raw["wv2"])
    wh2 = wh2.at[2 * HEAD_HIDDEN:3 * HEAD_HIDDEN, TREND_COL0:TREND_COL0 + TREND_COLS].set(raw["wt2"])
    bh2 = jnp.zeros((1, W_PAD), jnp.float32)
    bh2 = bh2.at[:, SENT_COL:SENT_COL + 1].set(raw["bs2"])
    bh2 = bh2.at[:, VOL_COL:VOL_COL + 1].set(raw["bv2"])
    bh2 = bh2.at[:, TREND_COL0:TREND_COL0 + TREND_COLS].set(raw["bt2"])

    p["wh1"], p["bh1"], p["wh2"], p["bh2"] = wh1, bh1, wh2, bh2
    return p


_PARAM_ORDER = ("w1", "b1", "s1", "t1",
                "w2", "b2", "s2", "t2",
                "w3", "b3", "s3", "t3",
                "wh1", "bh1", "wh2", "bh2")


@jax.jit
def neuro_economic_forward(x, params):
    B = x.shape[0]
    B8 = _round_up(max(B, 1), 8)
    tb = min(TILE_B_MAX, B8)
    if B8 >= 16:
        # Ensure >= 2 grid steps so both v7x TensorCores get work (no-op cost on v5e/v6e).
        tb = min(tb, _round_up((B8 + 1) // 2, 8))
    Bp = _round_up(B, tb)

    # Batch-only pad, and only when ragged; no wrapper-side feature padding / full copy.
    xp = x if Bp == B else jnp.pad(x, ((0, Bp - B), (0, 0)))

    operands = [params[name] for name in _PARAM_ORDER]

    def resident(arr):
        # Full-array block, constant block index -> fetched once, VMEM-resident.
        return pl.BlockSpec(arr.shape, lambda i: (0, 0))

    out = pl.pallas_call(
        _neuro_kernel,
        out_shape=jax.ShapeDtypeStruct((Bp, W_PAD), jnp.float32),
        grid=(Bp // tb,),
        in_specs=[pl.BlockSpec((tb, INPUT_SIZE), lambda i: (i, 0))]
        + [resident(a) for a in operands],
        out_specs=pl.BlockSpec((tb, W_PAD), lambda i: (i, 0)),
        compiler_params=pltpu.CompilerParams(
            dimension_semantics=("parallel",),   # megacore sharding on v7x; no-op v5e/v6e
        ),
    )(xp, *operands)

    return {
        "features": out[:B, 0:FEAT_DIM],
        "sentiment": out[:B, SENT_COL:SENT_COL + 1],
        "volatility": out[:B, VOL_COL:VOL_COL + 1],
        "trend": out[:B, TREND_COL0:TREND_COL0 + TREND_COLS],
    }


def _reference_forward(x, raw):
    """Pure-JAX reference on the *raw* (unpacked) parameters (eval-mode semantics)."""
    h = x
    for i in (1, 2, 3):
        h = jnp.maximum(h @ raw[f"w{i}"] + raw[f"b{i}"], 0.0)
        s = raw[f"gamma{i}"] / jnp.sqrt(raw[f"var{i}"] + BN_EPS)
        h = (h - raw[f"mean{i}"]) * s + raw[f"beta{i}"]
    feat = h
    sent = jnp.tanh(jnp.maximum(feat @ raw["ws1"] + raw["bs1"], 0.0) @ raw["ws2"] + raw["bs2"])
    vol = jax.nn.sigmoid(jnp.maximum(feat @ raw["wv1"] + raw["bv1"], 0.0) @ raw["wv2"] + raw["bv2"])
    trend = jax.nn.softmax(
        jnp.maximum(feat @ raw["wt1"] + raw["bt1"], 0.0) @ raw["wt2"] + raw["bt2"], axis=1)
    return {"sentiment": sent, "volatility": vol, "trend": trend, "features": feat}


if __name__ == "__main__":
    key = jax.random.PRNGKey(0)
    kp, kx = jax.random.split(key)
    raw = init_params(kp)
    params = prepare_params(raw)

    B = 8
    x = jax.random.normal(kx, (B, INPUT_SIZE), jnp.float32)

    out = jax.block_until_ready(neuro_economic_forward(x, params))
    ref = _reference_forward(x, raw)

    for name in ("features", "sentiment", "volatility", "trend"):
        assert out[name].shape == ref[name].shape, name
        err = float(jnp.max(jnp.abs(out[name] - ref[name])))
        assert jnp.allclose(out[name], ref[name], atol=1e-5, rtol=1e-5), (name, err)
    # Exact softmax normalization in the kernel -> rows sum to 1 to f32 rounding.
    assert jnp.allclose(jnp.sum(out["trend"], axis=1), 1.0, atol=1e-5)

    print("KERNEL_OK")
</pallas_src>

<mosaic_0001>
module attributes {stable_mosaic.version = 11 : i64} {
  func.func @_neuro_kernel(%arg0: i32, %arg1: memref<8x100xf32, #tpu.memory_space<vmem>>, %arg2: memref<100x256xf32, #tpu.memory_space<vmem>>, %arg3: memref<1x256xf32, #tpu.memory_space<vmem>>, %arg4: memref<1x256xf32, #tpu.memory_space<vmem>>, %arg5: memref<1x256xf32, #tpu.memory_space<vmem>>, %arg6: memref<256x128xf32, #tpu.memory_space<vmem>>, %arg7: memref<1x128xf32, #tpu.memory_space<vmem>>, %arg8: memref<1x128xf32, #tpu.memory_space<vmem>>, %arg9: memref<1x128xf32, #tpu.memory_space<vmem>>, %arg10: memref<128x128xf32, #tpu.memory_space<vmem>>, %arg11: memref<1x128xf32, #tpu.memory_space<vmem>>, %arg12: memref<1x128xf32, #tpu.memory_space<vmem>>, %arg13: memref<1x128xf32, #tpu.memory_space<vmem>>, %arg14: memref<128x128xf32, #tpu.memory_space<vmem>>, %arg15: memref<1x128xf32, #tpu.memory_space<vmem>>, %arg16: memref<128x128xf32, #tpu.memory_space<vmem>>, %arg17: memref<1x128xf32, #tpu.memory_space<vmem>>, %arg18: memref<8x128xf32, #tpu.memory_space<vmem>>) attributes {dimension_semantics = [#tpu.dimension_semantics<parallel>], iteration_bounds = array<i64: 1>, scalar_prefetch = 0 : i64, scratch_operands = 0 : i64, tpu.core_type = #tpu.core_type<tc>, window_params = [{transform_indices = @transform_0, window_bounds = array<i64: 8, 100>}, {pipeline_mode = #tpu.pipeline_mode<synchronous>, transform_indices = @transform_1, window_bounds = array<i64: 100, 256>}, {pipeline_mode = #tpu.pipeline_mode<synchronous>, transform_indices = @transform_2, window_bounds = array<i64: 1, 256>}, {pipeline_mode = #tpu.pipeline_mode<synchronous>, transform_indices = @transform_3, window_bounds = array<i64: 1, 256>}, {pipeline_mode = #tpu.pipeline_mode<synchronous>, transform_indices = @transform_4, window_bounds = array<i64: 1, 256>}, {pipeline_mode = #tpu.pipeline_mode<synchronous>, transform_indices = @transform_5, window_bounds = array<i64: 256, 128>}, {pipeline_mode = #tpu.pipeline_mode<synchronous>, transform_indices = @transform_6, window_bounds = array<i64: 1, 128>}, {pipeline_mode = #tpu.pipeline_mode<synchronous>, transform_indices = @transform_7, window_bounds = array<i64: 1, 128>}, {pipeline_mode = #tpu.pipeline_mode<synchronous>, transform_indices = @transform_8, window_bounds = array<i64: 1, 128>}, {pipeline_mode = #tpu.pipeline_mode<synchronous>, transform_indices = @transform_9, window_bounds = array<i64: 128, 128>}, {pipeline_mode = #tpu.pipeline_mode<synchronous>, transform_indices = @transform_10, window_bounds = array<i64: 1, 128>}, {pipeline_mode = #tpu.pipeline_mode<synchronous>, transform_indices = @transform_11, window_bounds = array<i64: 1, 128>}, {pipeline_mode = #tpu.pipeline_mode<synchronous>, transform_indices = @transform_12, window_bounds = array<i64: 1, 128>}, {pipeline_mode = #tpu.pipeline_mode<synchronous>, transform_indices = @transform_13, window_bounds = array<i64: 128, 128>}, {pipeline_mode = #tpu.pipeline_mode<synchronous>, transform_indices = @transform_14, window_bounds = array<i64: 1, 128>}, {pipeline_mode = #tpu.pipeline_mode<synchronous>, transform_indices = @transform_15, window_bounds = array<i64: 128, 128>}, {pipeline_mode = #tpu.pipeline_mode<synchronous>, transform_indices = @transform_16, window_bounds = array<i64: 1, 128>}, {transform_indices = @transform_17, window_bounds = array<i64: 8, 128>}]} {
    %c0 = arith.constant 0 : index
    %c0_0 = arith.constant 0 : index
    %0 = vector.load %arg1[%c0, %c0_0] : memref<8x100xf32, #tpu.memory_space<vmem>>, vector<8x100xf32>
    %c0_1 = arith.constant 0 : index
    %c0_2 = arith.constant 0 : index
    %1 = vector.load %arg2[%c0_1, %c0_2] : memref<100x256xf32, #tpu.memory_space<vmem>>, vector<100x256xf32>
    %cst = arith.constant dense<0.000000e+00> : vector<8x256xf32>
    %2 = tpu.matmul %0, %1, %cst {dimension_numbers = #tpu.dot_dimension_numbers<[1], [0], [0], [1], [0, 0, 1, 1], [], []>} : vector<8x100xf32>, vector<100x256xf32>, vector<8x256xf32> -> vector<8x256xf32>
    %c0_3 = arith.constant 0 : index
    %c0_4 = arith.constant 0 : index
    %3 = vector.load %arg3[%c0_3, %c0_4] : memref<1x256xf32, #tpu.memory_space<vmem>>, vector<1x256xf32>
    %4 = vector.broadcast %3 : vector<1x256xf32> to vector<8x256xf32>
    %5 = arith.addf %2, %4 : vector<8x256xf32>
    %cst_5 = arith.constant 0.000000e+00 : f32
    %6 = vector.broadcast %cst_5 : f32 to vector<8x256xf32>
    %7 = arith.maximumf %5, %6 : vector<8x256xf32>
    %c0_6 = arith.constant 0 : index
    %c0_7 = arith.constant 0 : index
    %8 = vector.load %arg4[%c0_6, %c0_7] : memref<1x256xf32, #tpu.memory_space<vmem>>, vector<1x256xf32>
    %9 = vector.broadcast %8 : vector<1x256xf32> to vector<8x256xf32>
    %10 = arith.mulf %7, %9 : vector<8x256xf32>
    %c0_8 = arith.constant 0 : index
    %c0_9 = arith.constant 0 : index
    %11 = vector.load %arg5[%c0_8, %c0_9] : memref<1x256xf32, #tpu.memory_space<vmem>>, vector<1x256xf32>
    %12 = vector.broadcast %11 : vector<1x256xf32> to vector<8x256xf32>
    %13 = arith.addf %10, %12 : vector<8x256xf32>
    %c0_10 = arith.constant 0 : index
    %c0_11 = arith.constant 0 : index
    %14 = vector.load %arg6[%c0_10, %c0_11] : memref<256x128xf32, #tpu.memory_space<vmem>>, vector<256x128xf32>
    %cst_12 = arith.constant dense<0.000000e+00> : vector<8x128xf32>
    %15 = tpu.matmul %13, %14, %cst_12 {dimension_numbers = #tpu.dot_dimension_numbers<[1], [0], [0], [1], [0, 0, 1, 1], [], []>} : vector<8x256xf32>, vector<256x128xf32>, vector<8x128xf32> -> vector<8x128xf32>
    %c0_13 = arith.constant 0 : index
    %c0_14 = arith.constant 0 : index
    %16 = vector.load %arg7[%c0_13, %c0_14] : memref<1x128xf32, #tpu.memory_space<vmem>>, vector<1x128xf32>
    %17 = vector.broadcast %16 : vector<1x128xf32> to vector<8x128xf32>
    %18 = arith.addf %15, %17 : vector<8x128xf32>
    %cst_15 = arith.constant 0.000000e+00 : f32
    %19 = vector.broadcast %cst_15 : f32 to vector<8x128xf32>
    %20 = arith.maximumf %18, %19 : vector<8x128xf32>
    %c0_16 = arith.constant 0 : index
    %c0_17 = arith.constant 0 : index
    %21 = vector.load %arg8[%c0_16, %c0_17] : memref<1x128xf32, #tpu.memory_space<vmem>>, vector<1x128xf32>
    %22 = vector.broadcast %21 : vector<1x128xf32> to vector<8x128xf32>
    %23 = arith.mulf %20, %22 : vector<8x128xf32>
    %c0_18 = arith.constant 0 : index
    %c0_19 = arith.constant 0 : index
    %24 = vector.load %arg9[%c0_18, %c0_19] : memref<1x128xf32, #tpu.memory_space<vmem>>, vector<1x128xf32>
    %25 = vector.broadcast %24 : vector<1x128xf32> to vector<8x128xf32>
    %26 = arith.addf %23, %25 : vector<8x128xf32>
    %c0_20 = arith.constant 0 : index
    %c0_21 = arith.constant 0 : index
    %27 = vector.load %arg10[%c0_20, %c0_21] : memref<128x128xf32, #tpu.memory_space<vmem>>, vector<128x128xf32>
    %cst_22 = arith.constant dense<0.000000e+00> : vector<8x128xf32>
    %28 = tpu.matmul %26, %27, %cst_22 {dimension_numbers = #tpu.dot_dimension_numbers<[1], [0], [0], [1], [0, 0, 1, 1], [], []>} : vector<8x128xf32>, vector<128x128xf32>, vector<8x128xf32> -> vector<8x128xf32>
    %c0_23 = arith.constant 0 : index
    %c0_24 = arith.constant 0 : index
    %29 = vector.load %arg11[%c0_23, %c0_24] : memref<1x128xf32, #tpu.memory_space<vmem>>, vector<1x128xf32>
    %30 = vector.broadcast %29 : vector<1x128xf32> to vector<8x128xf32>
    %31 = arith.addf %28, %30 : vector<8x128xf32>
    %cst_25 = arith.constant 0.000000e+00 : f32
    %32 = vector.broadcast %cst_25 : f32 to vector<8x128xf32>
    %33 = arith.maximumf %31, %32 : vector<8x128xf32>
    %c0_26 = arith.constant 0 : index
    %c0_27 = arith.constant 0 : index
    %34 = vector.load %arg12[%c0_26, %c0_27] : memref<1x128xf32, #tpu.memory_space<vmem>>, vector<1x128xf32>
    %35 = vector.broadcast %34 : vector<1x128xf32> to vector<8x128xf32>
    %36 = arith.mulf %33, %35 : vector<8x128xf32>
    %c0_28 = arith.constant 0 : index
    %c0_29 = arith.constant 0 : index
    %37 = vector.load %arg13[%c0_28, %c0_29] : memref<1x128xf32, #tpu.memory_space<vmem>>, vector<1x128xf32>
    %38 = vector.broadcast %37 : vector<1x128xf32> to vector<8x128xf32>
    %39 = arith.addf %36, %38 : vector<8x128xf32>
    %c0_30 = arith.constant 0 : index
    %c0_31 = arith.constant 0 : index
    %40 = vector.load %arg14[%c0_30, %c0_31] : memref<128x128xf32, #tpu.memory_space<vmem>>, vector<128x128xf32>
    %cst_32 = arith.constant dense<0.000000e+00> : vector<8x128xf32>
    %41 = tpu.matmul %39, %40, %cst_32 {dimension_numbers = #tpu.dot_dimension_numbers<[1], [0], [0], [1], [0, 0, 1, 1], [], []>} : vector<8x128xf32>, vector<128x128xf32>, vector<8x128xf32> -> vector<8x128xf32>
    %c0_33 = arith.constant 0 : index
    %c0_34 = arith.constant 0 : index
    %42 = vector.load %arg15[%c0_33, %c0_34] : memref<1x128xf32, #tpu.memory_space<vmem>>, vector<1x128xf32>
    %43 = vector.broadcast %42 : vector<1x128xf32> to vector<8x128xf32>
    %44 = arith.addf %41, %43 : vector<8x128xf32>
    %cst_35 = arith.constant 0.000000e+00 : f32
    %45 = vector.broadcast %cst_35 : f32 to vector<8x128xf32>
    %46 = arith.maximumf %44, %45 : vector<8x128xf32>
    %c0_36 = arith.constant 0 : index
    %c0_37 = arith.constant 0 : index
    %47 = vector.load %arg16[%c0_36, %c0_37] : memref<128x128xf32, #tpu.memory_space<vmem>>, vector<128x128xf32>
    %cst_38 = arith.constant dense<0.000000e+00> : vector<8x128xf32>
    %48 = tpu.matmul %46, %47, %cst_38 {dimension_numbers = #tpu.dot_dimension_numbers<[1], [0], [0], [1], [0, 0, 1, 1], [], []>} : vector<8x128xf32>, vector<128x128xf32>, vector<8x128xf32> -> vector<8x128xf32>
    %c0_39 = arith.constant 0 : index
    %c0_40 = arith.constant 0 : index
    %49 = vector.load %arg17[%c0_39, %c0_40] : memref<1x128xf32, #tpu.memory_space<vmem>>, vector<1x128xf32>
    %50 = vector.broadcast %49 : vector<1x128xf32> to vector<8x128xf32>
    %51 = arith.addf %48, %50 : vector<8x128xf32>
    %52 = tpu.iota {dimensions = array<i32: 1>} : vector<8x128xi32>
    %c66_i32 = arith.constant 66 : i32
    %53 = vector.broadcast %c66_i32 : i32 to vector<8x128xi32>
    %54 = arith.cmpi sge, %52, %53 : vector<8x128xi32>
    %c69_i32 = arith.constant 69 : i32
    %55 = vector.broadcast %c69_i32 : i32 to vector<8x128xi32>
    %56 = arith.cmpi slt, %52, %55 : vector<8x128xi32>
    %57 = arith.andi %54, %56 : vector<8x128xi1>
    %cst_41 = arith.constant -1.000000e+30 : f32
    %58 = vector.broadcast %cst_41 : f32 to vector<8x128xf32>
    %59 = arith.select %57, %51, %58 : vector<8x128xi1>, vector<8x128xf32>
    %cst_42 = arith.constant dense<0xFF800000> : vector<8xf32>
    %60 = vector.multi_reduction <maximumf>, %59, %cst_42 [1] : vector<8x128xf32> to vector<8xf32>
    %61 = vector.shape_cast %60 : vector<8xf32> to vector<8x1xf32>
    %62 = vector.broadcast %61 : vector<8x1xf32> to vector<8x128xf32>
    %63 = arith.subf %51, %62 : vector<8x128xf32>
    %64 = math.exp %63 : vector<8x128xf32>
    %cst_43 = arith.constant 0.000000e+00 : f32
    %65 = vector.broadcast %cst_43 : f32 to vector<8x128xf32>
    %66 = arith.select %57, %64, %65 : vector<8x128xi1>, vector<8x128xf32>
    %cst_44 = arith.constant dense<0.000000e+00> : vector<8xf32>
    %67 = vector.multi_reduction <add>, %66, %cst_44 [1] : vector<8x128xf32> to vector<8xf32>
    %68 = vector.shape_cast %67 : vector<8xf32> to vector<8x1xf32>
    %69 = vector.broadcast %68 : vector<8x1xf32> to vector<8x128xf32>
    %70 = arith.divf %66, %69 : vector<8x128xf32>
    %c64_i32 = arith.constant 64 : i32
    %71 = vector.broadcast %c64_i32 : i32 to vector<8x128xi32>
    %72 = arith.cmpi eq, %52, %71 : vector<8x128xi32>
    %73 = math.tanh %51 : vector<8x128xf32>
    %c65_i32 = arith.constant 65 : i32
    %74 = vector.broadcast %c65_i32 : i32 to vector<8x128xi32>
    %75 = arith.cmpi eq, %52, %74 : vector<8x128xi32>
    %76 = arith.negf %51 : vector<8x128xf32>
    %77 = math.exp %76 : vector<8x128xf32>
    %cst_45 = arith.constant 1.000000e+00 : f32
    %78 = vector.broadcast %cst_45 : f32 to vector<8x128xf32>
    %79 = arith.addf %78, %77 : vector<8x128xf32>
    %80 = arith.divf %78, %79 : vector<8x128xf32>
    %81 = arith.select %57, %70, %39 : vector<8x128xi1>, vector<8x128xf32>
    %82 = arith.select %75, %80, %81 : vector<8x128xi1>, vector<8x128xf32>
    %83 = arith.select %72, %73, %82 : vector<8x128xi1>, vector<8x128xf32>
    %c0_46 = arith.constant 0 : index
    %c0_47 = arith.constant 0 : index
    %84 = vector.load %arg18[%c0_46, %c0_47] : memref<8x128xf32, #tpu.memory_space<vmem>>, vector<8x128xf32>
    tpu.vector_store %arg18[%c0_46, %c0_47], %83 {strides = array<i32>} : memref<8x128xf32, #tpu.memory_space<vmem>>, vector<8x128xf32>,
    return
  }
  func.func @transform_0(%arg0: i32) -> (i32, i32) {
    %c0_i32 = arith.constant 0 : i32
    %c0_i32_0 = arith.constant 0 : i32
    return %arg0, %c0_i32 : i32, i32
  }
  func.func @transform_1(%arg0: i32) -> (i32, i32) {
    %c0_i32 = arith.constant 0 : i32
    %c0_i32_0 = arith.constant 0 : i32
    %c0_i32_1 = arith.constant 0 : i32
    return %c0_i32, %c0_i32_0 : i32, i32
  }
  func.func @transform_2(%arg0: i32) -> (i32, i32) {
    %c0_i32 = arith.constant 0 : i32
    %c0_i32_0 = arith.constant 0 : i32
    %c0_i32_1 = arith.constant 0 : i32
    return %c0_i32, %c0_i32_0 : i32, i32
  }
  func.func @transform_3(%arg0: i32) -> (i32, i32) {
    %c0_i32 = arith.constant 0 : i32
    %c0_i32_0 = arith.constant 0 : i32
    %c0_i32_1 = arith.constant 0 : i32
    return %c0_i32, %c0_i32_0 : i32, i32
  }
  func.func @transform_4(%arg0: i32) -> (i32, i32) {
    %c0_i32 = arith.constant 0 : i32
    %c0_i32_0 = arith.constant 0 : i32
    %c0_i32_1 = arith.constant 0 : i32
    return %c0_i32, %c0_i32_0 : i32, i32
  }
  func.func @transform_5(%arg0: i32) -> (i32, i32) {
    %c0_i32 = arith.constant 0 : i32
    %c0_i32_0 = arith.constant 0 : i32
    %c0_i32_1 = arith.constant 0 : i32
    return %c0_i32, %c0_i32_0 : i32, i32
  }
  func.func @transform_6(%arg0: i32) -> (i32, i32) {
    %c0_i32 = arith.constant 0 : i32
    %c0_i32_0 = arith.constant 0 : i32
    %c0_i32_1 = arith.constant 0 : i32
    return %c0_i32, %c0_i32_0 : i32, i32
  }
  func.func @transform_7(%arg0: i32) -> (i32, i32) {
    %c0_i32 = arith.constant 0 : i32
    %c0_i32_0 = arith.constant 0 : i32
    %c0_i32_1 = arith.constant 0 : i32
    return %c0_i32, %c0_i32_0 : i32, i32
  }
  func.func @transform_8(%arg0: i32) -> (i32, i32) {
    %c0_i32 = arith.constant 0 : i32
    %c0_i32_0 = arith.constant 0 : i32
    %c0_i32_1 = arith.constant 0 : i32
    return %c0_i32, %c0_i32_0 : i32, i32
  }
  func.func @transform_9(%arg0: i32) -> (i32, i32) {
    %c0_i32 = arith.constant 0 : i32
    %c0_i32_0 = arith.constant 0 : i32
    %c0_i32_1 = arith.constant 0 : i32
    return %c0_i32, %c0_i32_0 : i32, i32
  }
  func.func @transform_10(%arg0: i32) -> (i32, i32) {
    %c0_i32 = arith.constant 0 : i32
    %c0_i32_0 = arith.constant 0 : i32
    %c0_i32_1 = arith.constant 0 : i32
    return %c0_i32, %c0_i32_0 : i32, i32
  }
  func.func @transform_11(%arg0: i32) -> (i32, i32) {
    %c0_i32 = arith.constant 0 : i32
    %c0_i32_0 = arith.constant 0 : i32
    %c0_i32_1 = arith.constant 0 : i32
    return %c0_i32, %c0_i32_0 : i32, i32
  }
  func.func @transform_12(%arg0: i32) -> (i32, i32) {
    %c0_i32 = arith.constant 0 : i32
    %c0_i32_0 = arith.constant 0 : i32
    %c0_i32_1 = arith.constant 0 : i32
    return %c0_i32, %c0_i32_0 : i32, i32
  }
  func.func @transform_13(%arg0: i32) -> (i32, i32) {
    %c0_i32 = arith.constant 0 : i32
    %c0_i32_0 = arith.constant 0 : i32
    %c0_i32_1 = arith.constant 0 : i32
    return %c0_i32, %c0_i32_0 : i32, i32
  }
  func.func @transform_14(%arg0: i32) -> (i32, i32) {
    %c0_i32 = arith.constant 0 : i32
    %c0_i32_0 = arith.constant 0 : i32
    %c0_i32_1 = arith.constant 0 : i32
    return %c0_i32, %c0_i32_0 : i32, i32
  }
  func.func @transform_15(%arg0: i32) -> (i32, i32) {
    %c0_i32 = arith.constant 0 : i32
    %c0_i32_0 = arith.constant 0 : i32
    %c0_i32_1 = arith.constant 0 : i32
    return %c0_i32, %c0_i32_0 : i32, i32
  }
  func.func @transform_16(%arg0: i32) -> (i32, i32) {
    %c0_i32 = arith.constant 0 : i32
    %c0_i32_0 = arith.constant 0 : i32
    %c0_i32_1 = arith.constant 0 : i32
    return %c0_i32, %c0_i32_0 : i32, i32
  }
  func.func @transform_17(%arg0: i32) -> (i32, i32) {
    %c0_i32 = arith.constant 0 : i32
    %c0_i32_0 = arith.constant 0 : i32
    return %arg0, %c0_i32 : i32, i32
  }
}

</mosaic_0001>

<bundles_post_ra>
// kernel: neuro_economic_forward.1
= control target key start
LH: loop header
LB: loop body
LE: loop exit
PB: predicated region body
PF: predicated region fallthrough
CT: control target
= control target key end

     0   :  { %s1509_s0 = inlined_call_operand.hbm [shape: f32[8,100], index: 0, kind: input, shape index: {}]   ;;  %s1510_s1 = inlined_call_operand.hbm [shape: f32[100,256], index: 1, kind: input, shape index: {}]   ;;  %s1511_s2 = inlined_call_operand.vmem [shape: f32[1,256], index: 2, kind: input, shape index: {}]   ;;  %s1512_s3 = inlined_call_operand.vmem [shape: f32[1,256], index: 3, kind: input, shape index: {}]   ;;  %s1513_s4 = inlined_call_operand.vmem [shape: f32[1,256], index: 4, kind: input, shape index: {}]   ;;  %s1514_s5 = inlined_call_operand.hbm [shape: f32[256,128], index: 5, kind: input, shape index: {}]   ;;  %s1515_s6 = inlined_call_operand.vmem [shape: f32[1,128], index: 6, kind: input, shape index: {}]   ;;  %s1516_s7 = inlined_call_operand.vmem [shape: f32[1,128], index: 7, kind: input, shape index: {}]   ;;  %s1517_s8 = inlined_call_operand.vmem [shape: f32[1,128], index: 8, kind: input, shape index: {}]   ;;  %s1518_s9 = inlined_call_operand.hbm [shape: f32[128,128], index: 9, kind: input, shape index: {}]   ;;  %s1519_s10 = inlined_call_operand.vmem [shape: f32[1,128], index: 10, kind: input, shape index: {}]   ;;  %s1520_s11 = inlined_call_operand.vmem [shape: f32[1,128], index: 11, kind: input, shape index: {}]   ;;  %s1521_s12 = inlined_call_operand.vmem [shape: f32[1,128], index: 12, kind: input, shape index: {}]   ;;  %s1522_s13 = inlined_call_operand.hbm [shape: f32[128,128], index: 13, kind: input, shape index: {}]   ;;  %s1523_s14 = inlined_call_operand.vmem [shape: f32[1,128], index: 14, kind: input, shape index: {}]   ;;  %s1524_s15 = inlined_call_operand.hbm [shape: f32[128,128], index: 15, kind: input, shape index: {}]   ;;  %s1525_s16 = inlined_call_operand.vmem [shape: f32[1,128], index: 16, kind: input, shape index: {}]   ;;  %s1526_s17 = inlined_call_operand.vmem [shape: f32[8,128], index: 17, kind: output, shape index: {}]  }
   0x1   :  { %1529 = sst [smem:[#allocation16_spill]] %s1509_s0 }
   0x2   :  { %1530 = sst [smem:[#allocation17_spill]] %s1510_s1 }
   0x3   :  { %1531 = sst [smem:[#allocation18_spill]] %s1525_s16 }
   0x4   :  { %1532 = sst [smem:[#allocation19_spill]] %s1526_s17 }
   0x5   :  { %22 = vsyncpa [#allocation3], 0 }
   0x6   :  { %23 = vsyncpa [#allocation5], 0 }
   0x7   :  { %24 = vsyncpa [#allocation8], 0 }
   0x8   :  { %25 = vsyncpa [#allocation11], 0  ;;  %s1241_s24 = smov [#allocation4]   ;;  %s1533_s28 = sld [smem:[#allocation17_spill]] }
   0x9   :  { %s41_s25 = sshll.u32 %s1241_s24, 4  ;;  %s42_s25 = int_to_ptr.vmem [resolvable:$true] %s41_s25 }
   0xe   :  { %s1101_s29 = scalar_lea.hbm %s1533_s28, 3328 }
   0xf   :  { %p1102_p0 = scmp.ne.s32.totalorder %s1533_s28, %s1101_s29  ;;  %p1105_p1 = scmp.lt.u32.totalorder %s1101_s29, %s1533_s28 }
  0x11   :  { %p1107_p2 = pnand %p1105_p1, %p1102_p0 }
  0x13   :  { %1110 = shalt.err (!%p1107_p2)
}
  0x14   :  { %s1111_s1 = scalar_lea.vmem %s42_s25, 3328  ;;  %p1116_p4 = scmp.lt.s32.totalorder %s42_s25, %s42_s25 }
  0x15   :  { %p1112_p3 = scmp.ne.s32.totalorder %s42_s25, %s1111_s1  ;;  %p1117_p5 = scmp.lt.s32.totalorder %s1111_s1, %s1111_s1 }
  0x17   :  { %p1118_p6 = por %p1117_p5, %p1116_p4 }
  0x19   :  { %p1119_p7 = pnand %p1118_p6, %p1112_p3 }
  0x1b   :  { %1122 = shalt.err (!%p1119_p7)
}
  0x1c   :  { %s1242_s20 = smov 256   ;;  %s1243_s21 = smov 16  }
  0x1d   :  { %47 = dma.hbm_to_vmem [thread:$0]  %s1533_s28, 3328, %s42_s25, [#allocation5], %s1242_s20, %s1242_s20, %s1243_s21  }
  0x1e   :  { %s1244_s24 = smov [#allocation7]   ;;  %s1245_s27 = smov [#allocation2]  }
  0x1f   :  { %s77_s26 = sshll.u32 %s1244_s24, 4  ;;  %s32_s29 = sshll.u32 %s1245_s27, 4  ;;  %s78_s26 = int_to_ptr.vmem [resolvable:$true] %s77_s26  ;;  %s33_s29 = int_to_ptr.vmem [resolvable:$true] %s32_s29 }
  0x20   :  { %s1123_s18 = scalar_lea.hbm %s1518_s9, 2048 }
  0x21   :  { %p1124_p8 = scmp.ne.s32.totalorder %s1518_s9, %s1123_s18  ;;  %p1127_p9 = scmp.lt.u32.totalorder %s1123_s18, %s1518_s9 }
  0x23   :  { %p1129_p10 = pnand %p1127_p9, %p1124_p8 }
  0x25   :  { %1132 = shalt.err (!%p1129_p10)
}
  0x26   :  { %s1133_s25 = scalar_lea.vmem %s78_s26, 2048  ;;  %p1138_p12 = scmp.lt.s32.totalorder %s78_s26, %s78_s26 }
  0x27   :  { %p1134_p11 = scmp.ne.s32.totalorder %s78_s26, %s1133_s25  ;;  %p1139_p13 = scmp.lt.s32.totalorder %s1133_s25, %s1133_s25 }
  0x29   :  { %p1140_p0 = por %p1139_p13, %p1138_p12 }
  0x2b   :  { %p1141_p1 = pnand %p1140_p0, %p1134_p11 }
  0x2d   :  { %1144 = shalt.err (!%p1141_p1)
}
  0x2e   :  { %s1246_s28 = smov 128   ;;  %s1247_s20 = smov 8  }
  0x2f   :  { %83 = dma.hbm_to_vmem [thread:$0]  %s1518_s9, 2048, %s78_s26, [#allocation8], %s1246_s28, %s1246_s28, %s1247_s20  }
  0x30   :  { %s1534_s23 = sld [smem:[#allocation16_spill]] }
  0x36   :  { %s1145_s24 = scalar_lea.hbm %s1534_s23, 128 }
  0x37   :  { %p1146_p2 = scmp.ne.s32.totalorder %s1534_s23, %s1145_s24  ;;  %p1149_p3 = scmp.lt.u32.totalorder %s1145_s24, %s1534_s23 }
  0x39   :  { %p1151_p4 = pnand %p1149_p3, %p1146_p2 }
  0x3b   :  { %1154 = shalt.err (!%p1151_p4)
}
  0x3c   :  { %s1155_s19 = scalar_lea.vmem %s33_s29, 128  ;;  %p1160_p6 = scmp.lt.s32.totalorder %s33_s29, %s33_s29 }
  0x3d   :  { %p1156_p5 = scmp.ne.s32.totalorder %s33_s29, %s1155_s19  ;;  %p1161_p7 = scmp.lt.s32.totalorder %s1155_s19, %s1155_s19 }
  0x3f   :  { %p1162_p8 = por %p1161_p7, %p1160_p6 }
  0x41   :  { %p1163_p9 = pnand %p1162_p8, %p1156_p5 }
  0x43   :  { %1166 = shalt.err (!%p1163_p9)
}
  0x44   :  { %35 = dma.hbm_to_vmem [thread:$0]  %s1534_s23, 128, %s33_s29, [#allocation3]  }
  0x45   :  { %s1248_s1 = smov [#allocation6]   ;;  %s1249_s21 = smov [#allocation9]  }
  0x46   :  { %s59_s25 = sshll.u32 %s1248_s1, 4  ;;  %s95_s22 = sshll.u32 %s1249_s21, 4  ;;  %s60_s25 = int_to_ptr.vmem [resolvable:$true] %s59_s25  ;;  %s96_s22 = int_to_ptr.vmem [resolvable:$true] %s95_s22 }
  0x47   :  { %s1167_s24 = scalar_lea.hbm %s1514_s5, 4096 }
  0x48   :  { %p1168_p10 = scmp.ne.s32.totalorder %s1514_s5, %s1167_s24  ;;  %p1171_p11 = scmp.lt.u32.totalorder %s1167_s24, %s1514_s5 }
  0x4a   :  { %p1173_p12 = pnand %p1171_p11, %p1168_p10 }
  0x4c   :  { %1176 = shalt.err (!%p1173_p12)
}
  0x4d   :  { %s1177_s29 = scalar_lea.vmem %s60_s25, 4096  ;;  %p1182_p0 = scmp.lt.s32.totalorder %s60_s25, %s60_s25 }
  0x4e   :  { %p1178_p13 = scmp.ne.s32.totalorder %s60_s25, %s1177_s29  ;;  %p1183_p1 = scmp.lt.s32.totalorder %s1177_s29, %s1177_s29 }
  0x50   :  { %p1184_p2 = por %p1183_p1, %p1182_p0 }
  0x52   :  { %p1185_p3 = pnand %p1184_p2, %p1178_p13 }
  0x54   :  { %1188 = shalt.err (!%p1185_p3)
}
  0x55   :  { %65 = dma.hbm_to_vmem [thread:$0]  %s1514_s5, 4096, %s60_s25, [#allocation5], %s1246_s28, %s1246_s28, %s1247_s20  }
  0x56   :  { %s1189_s1 = scalar_lea.hbm %s1522_s13, 2048 }
  0x57   :  { %p1190_p4 = scmp.ne.s32.totalorder %s1522_s13, %s1189_s1  ;;  %p1193_p5 = scmp.lt.u32.totalorder %s1189_s1, %s1522_s13 }
  0x59   :  { %p1195_p6 = pnand %p1193_p5, %p1190_p4 }
  0x5b   :  { %1198 = shalt.err (!%p1195_p6)
}
  0x5c   :  { %s1199_s27 = scalar_lea.vmem %s96_s22, 2048  ;;  %p1204_p8 = scmp.lt.s32.totalorder %s96_s22, %s96_s22 }
  0x5d   :  { %p1200_p7 = scmp.ne.s32.totalorder %s96_s22, %s1199_s27  ;;  %p1205_p9 = scmp.lt.s32.totalorder %s1199_s27, %s1199_s27 }
  0x5f   :  { %p1206_p10 = por %p1205_p9, %p1204_p8 }
  0x61   :  { %p1207_p11 = pnand %p1206_p10, %p1200_p7 }
  0x63   :  { %1210 = shalt.err (!%p1207_p11)
}
  0x64   :  { %101 = dma.hbm_to_vmem [thread:$0]  %s1522_s13, 2048, %s96_s22, [#allocation8], %s1246_s28, %s1246_s28, %s1247_s20  }
  0x65   :  { %s1250_s0 = smov [#allocation10]   ;;  %s1211_s23 = scalar_lea.hbm %s1524_s15, 2048 }
  0x66   :  { %s109_s30 = sshll.u32 %s1250_s0, 4  ;;  %p1212_p12 = scmp.ne.s32.totalorder %s1524_s15, %s1211_s23  ;;  %s110_s30 = int_to_ptr.vmem [resolvable:$true] %s109_s30 }
  0x67   :  { %p1215_p13 = scmp.lt.u32.totalorder %s1211_s23, %s1524_s15 }
  0x69   :  { %p1217_p0 = pnand %p1215_p13, %p1212_p12 }
  0x6b   :  { %1220 = shalt.err (!%p1217_p0)
}
  0x6c   :  { %s1221_s21 = scalar_lea.vmem %s110_s30, 2048  ;;  %p1226_p2 = scmp.lt.s32.totalorder %s110_s30, %s110_s30 }
  0x6d   :  { %p1222_p1 = scmp.ne.s32.totalorder %s110_s30, %s1221_s21  ;;  %p1227_p3 = scmp.lt.s32.totalorder %s1221_s21, %s1221_s21 }
  0x6f   :  { %p1228_p4 = por %p1227_p3, %p1226_p2 }
  0x71   :  { %p1229_p5 = pnand %p1228_p4, %p1222_p1 }
  0x73   :  { %1232 = shalt.err (!%p1229_p5)
}
  0x74   :  { %115 = dma.hbm_to_vmem [thread:$0]  %s1524_s15, 2048, %s110_s30, [#allocation11], %s1246_s28, %s1246_s28, %s1247_s20  }
  0x75   :  { %1233 = dma.done.wait [#allocation3], 128  }
  0x76   :  { %1234 = vsyncadd [#allocation3], 4294967168 }
  0x77   :  { %1235 = dma.done.wait [#allocation5], 7424  }
  0x78   :  { %1236 = vsyncadd [#allocation5], 4294959872 }
  0x79   :  { %1237 = dma.done.wait [#allocation8], 4096  }
  0x7a   :  { %1238 = vsyncadd [#allocation8], 4294963200 }
  0x7b   :  { %1239 = dma.done.wait [#allocation11], 2048  }
  0x7c   :  { %1240 = vsyncadd [#allocation11], 4294965248  ;;  %v1251_v0 = vmov 0.0   ;;  %v138_v1 = vld [vmem:[#allocation4 + $0x8] sm:$0xff]  ;;  %v140_v2 = vld [vmem:[#allocation4 + $0x18] sm:$0xff]  ;;  %vm179_vm0 = vcmask 1043456  }
  0x7d   :  { %250 = vmatprep.mubr.f32.mxu0 %v1251_v0  ;;  %v137_v3 = vld [vmem:[#allocation4] sm:$0xff]  ;;  %v950_v4 = vpack.c.bf16 %v140_v2, %v138_v1  ;;  %v139_v5 = vld [vmem:[#allocation4 + $0x10] sm:$0xff]  ;;  %v142_v6 = vld [vmem:[#allocation4 + $0x28] sm:$0xff]  ;;  %vm175_vm1 = vcmask 818176   ;;  %vm1253_vm2 = vmmov 0   ;;  %s1535_s23 = sld [smem:[#allocation18_spill]] }
  0x7e   :  { %v144_v7 = vld [vmem:[#allocation4 + $0x38] sm:$0xff]  ;;  %v952_v8 = vpack.c.bf16 %v139_v5, %v137_v3  ;;  %v141_v10 = vld [vmem:[#allocation4 + $0x20] sm:$0xff]  ;;  %v143_v11 = vld [vmem:[#allocation4 + $0x30] sm:$0xff]  ;;  %s1538_s9 = sld [smem:[#allocation19_spill]] }
  0x7f   :  { %v954_v9 = vpack.c.bf16 %v144_v7, %v142_v6  ;;  %v146_v12 = vld [vmem:[#allocation4 + $0x48] sm:$0xff]  ;;  %951 = vmatprep.subr.bf16.mxu0 %v950_v4  ;;  %v148_v13 = vld [vmem:[#allocation4 + $0x58] sm:$0xff]  ;;  %v956_v14 = vpack.c.bf16 %v143_v11, %v141_v10  ;;  %v145_v16 = vld [vmem:[#allocation4 + $0x40] sm:$0xff] }
  0x80   :  { %953 = vmatpush1.bf16.msra.mxu0 %v952_v8  ;;  %v958_v15 = vpack.c.bf16 %v148_v13, %v146_v12  ;;  %v147_v17 = vld [vmem:[#allocation4 + $0x50] sm:$0xff]  ;;  %v150_v18 = vld [vmem:[#allocation4 + $0x68] sm:$0xff]  ;;  %v152_v19 = vld [vmem:[#allocation4 + $0x78] sm:$0xff] }
  0x81   :  { %955 = vmatprep.subr.bf16.mxu0 %v954_v9  ;;  %v149_v20 = vld [vmem:[#allocation4 + $0x60] sm:$0xff]  ;;  %v960_v21 = vpack.c.bf16 %v147_v17, %v145_v16  ;;  %v151_v22 = vld [vmem:[#allocation4 + $0x70] sm:$0xff]  ;;  %v154_v23 = vld [vmem:[#allocation4 + $0x88] sm:$0xff]  ;;  %v962_v25 = vpack.c.bf16 %v152_v19, %v150_v18 }
  0x82   :  { %v156_v24 = vld [vmem:[#allocation4 + $0x98] sm:$0xff]  ;;  %v303_v26 = vld [vmem:[#allocation6 + $0x80] sm:$0xff]  ;;  %v305_v31 = vld [vmem:[#allocation6 + $0x90] sm:$0xff]  ;;  %v964_v38 = vpack.c.bf16 %v151_v22, %v149_v20 }
  0x83   :  { %v304_v27 = vld [vmem:[#allocation6 + $0x88] sm:$0xff]  ;;  %v287_v28 = vld [vmem:[#allocation6] sm:$0xff]  ;;  %v306_v32 = vld [vmem:[#allocation6 + $0x98] sm:$0xff]  ;;  %v966_v40 = vpack.c.bf16 %v156_v24, %v154_v23 }
  0x84   :  { %957 = vmatpush1.bf16.msra.mxu0 %v956_v14  ;;  %v974_v29 = vpack.c.bf16 %v304_v27, %v303_v26  ;;  %v288_v30 = vld [vmem:[#allocation6 + $0x8] sm:$0xff]  ;;  %v978_v34 = vpack.c.bf16 %v306_v32, %v305_v31  ;;  %v289_v35 = vld [vmem:[#allocation6 + $0x10] sm:$0xff]  ;;  %v290_v36 = vld [vmem:[#allocation6 + $0x18] sm:$0xff] }
  0x85   :  { %959 = vmatprep.subr.bf16.mxu0 %v958_v15  ;;  %v976_v33 = vpack.c.bf16 %v288_v30, %v287_v28  ;;  %v307_v37 = vld [vmem:[#allocation6 + $0xa0] sm:$0xff]  ;;  %v308_v39 = vld [vmem:[#allocation6 + $0xa8] sm:$0xff]  ;;  %v153_v41 = vld [vmem:[#allocation4 + $0x80] sm:$0xff]  ;;  %v980_v44 = vpack.c.bf16 %v290_v36, %v289_v35  ;;  %v1252_v28 = vmov 0.0|0.0  }
  0x86   :  { %975 = vmatprep.subr.bf16.mxu1 %v974_v29  ;;  %v155_v42 = vld [vmem:[#allocation4 + $0x90] sm:$0xff]  ;;  %v158_v43 = vld [vmem:[#allocation4 + $0xa8] sm:$0xff]  ;;  %v160_v45 = vld [vmem:[#allocation4 + $0xb8] sm:$0xff]  ;;  %v982_v46 = vpack.c.bf16 %v308_v39, %v307_v37 }
  0x87   :  { %977 = vmatpush3.bf16.msra.mxu1 %v976_v33  ;;  %v291_v47 = vld [vmem:[#allocation6 + $0x20] sm:$0xff]  ;;  %v292_v48 = vld [vmem:[#allocation6 + $0x28] sm:$0xff]  ;;  %v309_v49 = vld [vmem:[#allocation6 + $0xb0] sm:$0xff]  ;;  %v968_v51 = vpack.c.bf16 %v155_v42, %v153_v41  ;;  %v970_v52 = vpack.c.bf16 %v160_v45, %v158_v43  ;;  %v165_v41 = vlaneseq }
  0x88   :  { %961 = vmatpush1.bf16.msra.mxu0 %v960_v21  ;;  %979 = vmatprep.subr.bf16.mxu1 %v978_v34  ;;  %v310_v50 = vld [vmem:[#allocation6 + $0xb8] sm:$0xff]  ;;  %v157_v53 = vld [vmem:[#allocation4 + $0xa0] sm:$0xff]  ;;  %v159_v54 = vld [vmem:[#allocation4 + $0xb0] sm:$0xff]  ;;  %v984_v55 = vpack.c.bf16 %v292_v48, %v291_v47 }
  0x89   :  { %963 = vmatprep.subr.bf16.mxu0 %v962_v25  ;;  %v986_v56 = vpack.c.bf16 %v310_v50, %v309_v49  ;;  %v293_v57 = vld [vmem:[#allocation6 + $0x30] sm:$0xff]  ;;  %v294_v58 = vld [vmem:[#allocation6 + $0x38] sm:$0xff]  ;;  %v311_v59 = vld [vmem:[#allocation6 + $0xc0] sm:$0xff]  ;;  %v972_v61 = vpack.c.bf16 %v159_v54, %v157_v53  ;;  %v166_v42 = vshrl.u32 %v165_v41, 7 }
  0x8a   :  { %v312_v60 = vld [vmem:[#allocation6 + $0xc8] sm:$0xff]  ;;  %v988_v62 = vpack.c.bf16 %v294_v58, %v293_v57  ;;  %v162_v63 = vld [vmem:[#allocation4 + $0xc8] sm:$0xf]  ;;  %v295_v2 = vld [vmem:[#allocation6 + $0x40] sm:$0xff] }
  0x8b   :  { %981 = vmatpush3.bf16.msra.mxu1 %v980_v44  ;;  %v990_v1 = vpack.c.bf16 %v312_v60, %v311_v59  ;;  %v296_v3 = vld [vmem:[#allocation6 + $0x48] sm:$0xff]  ;;  %v313_v4 = vld [vmem:[#allocation6 + $0xd0] sm:$0xff]  ;;  %v314_v5 = vld [vmem:[#allocation6 + $0xd8] sm:$0xff]  ;;  %v167_v43 = vsub.s32 0, %v166_v42  ;;  %v171_v45 = vsub.s32 1, %v166_v42 }
  0x8c   :  { %965 = vmatpush1.bf16.msra.mxu0 %v964_v38  ;;  %983 = vmatprep.subr.bf16.mxu1 %v982_v46  ;;  %v161_v6 = vld [vmem:[#allocation4 + $0xc0] sm:$0xf]  ;;  %v992_v7 = vpack.c.bf16 %v296_v3, %v295_v2  ;;  %v136_v8 = vld [vmem:[#allocation2] sm:$0xff]  ;;  %v994_v9 = vpack.c.bf16 %v314_v5, %v313_v4  ;;  %v298_v11 = vld [vmem:[#allocation6 + $0x58] sm:$0xff] }
  0x8d   :  { %967 = vmatprep.subr.bf16.mxu0 %v966_v40  ;;  %v297_v10 = vld [vmem:[#allocation6 + $0x50] sm:$0xff]  ;;  %v315_v13 = vld [vmem:[#allocation6 + $0xe0] sm:$0xff]  ;;  %v316_v14 = vld [vmem:[#allocation6 + $0xe8] sm:$0xff] }
  0x8e   :  { %v996_v12 = vpack.c.bf16 %v298_v11, %v297_v10  ;;  %v998_v15 = vpack.c.bf16 %v316_v14, %v315_v13  ;;  %v299_v16 = vld [vmem:[#allocation6 + $0x60] sm:$0xff]  ;;  %v300_v17 = vld [vmem:[#allocation6 + $0x68] sm:$0xff]  ;;  %v317_v19 = vld [vmem:[#allocation6 + $0xf0] sm:$0xff] }
  0x8f   :  { %985 = vmatpush3.bf16.msra.mxu1 %v984_v55  ;;  %v1000_v18 = vpack.c.bf16 %v300_v17, %v299_v16  ;;  %v318_v20 = vld [vmem:[#allocation6 + $0xf8] sm:$0xff]  ;;  %v301_v22 = vld [vmem:[#allocation6 + $0x70] sm:$0xff]  ;;  %v413_v25 = vld [vmem:[#allocation7] sm:$0xff] }
  0x90   :  { %969 = vmatpush1.bf16.msra.mxu0 %v968_v51  ;;  %987 = vmatprep.subr.bf16.mxu1 %v986_v56  ;;  %v1002_v21 = vpack.c.bf16 %v318_v20, %v317_v19  ;;  %v302_v23 = vld [vmem:[#allocation6 + $0x78] sm:$0xff]  ;;  %v414_v26 = vld [vmem:[#allocation7 + $0x8] sm:$0xff]  ;;  %v415_v27 = vld [vmem:[#allocation7 + $0x10] sm:$0xff] }
  0x91   :  { %971 = vmatprep.subr.bf16.mxu0 %v970_v52  ;;  %v1004_v24 = vpack.c.bf16 %v302_v23, %v301_v22  ;;  %v1007_v29 = vpack.c.bf16 %v414_v26, %v413_v25  ;;  %v416_v30 = vld [vmem:[#allocation7 + $0x18] sm:$0xff]  ;;  %v417_v32 = vld [vmem:[#allocation7 + $0x20] sm:$0xff]  ;;  %v418_v33 = vld [vmem:[#allocation7 + $0x28] sm:$0xff] }
  0x92   :  { %v1010_v31 = vpack.c.bf16 %v416_v30, %v415_v27  ;;  %v1013_v34 = vpack.c.bf16 %v418_v33, %v417_v32  ;;  %v419_v35 = vld [vmem:[#allocation7 + $0x30] sm:$0xff]  ;;  %v420_v36 = vld [vmem:[#allocation7 + $0x38] sm:$0xff]  ;;  %v421_v38 = vld [vmem:[#allocation7 + $0x40] sm:$0xff] }
  0x93   :  { %989 = vmatpush3.bf16.msra.mxu1 %v988_v62  ;;  %v1016_v37 = vpack.c.bf16 %v420_v36, %v419_v35  ;;  %v422_v39 = vld [vmem:[#allocation7 + $0x48] sm:$0xff]  ;;  %v163_v44 = vld [vmem:[%s1511_s2] sm:$0x3]  ;;  %v424_v2 = vld [vmem:[#allocation7 + $0x58] sm:$0xff] }
  0x94   :  { %973 = vmatpush1.bf16.msra.mxu0 %v972_v61  ;;  %991 = vmatprep.subr.bf16.mxu1 %v990_v1  ;;  %v1019_v40 = vpack.c.bf16 %v422_v39, %v421_v38  ;;  %v168_v46 = vrot.slane %v163_v44, %v167_v43  ;;  %v259_v47 = vld [vmem:[%s1512_s3] sm:$0x3]  ;;  %v172_v48 = vrot.slane %v163_v44, %v171_v45  ;;  %v423_v1 = vld [vmem:[#allocation7 + $0x50] sm:$0xff]  ;;  %v426_v5 = vld [vmem:[#allocation7 + $0x68] sm:$0xff] }
  0x95   :  { %747 = vmatprep.subr.msk.mxu0 %vm179_vm0, %v162_v63  ;;  %v264_v51 = vrot.slane %v259_v47, %v167_v43  ;;  %v273_v53 = vld [vmem:[%s1513_s4] sm:$0x3]  ;;  %v268_v55 = vrot.slane %v259_v47, %v171_v45  ;;  %v1022_v3 = vpack.c.bf16 %v424_v2, %v423_v1  ;;  %v524_v11 = vld [vmem:[#allocation9 + $0x8] sm:$0xff]  ;;  %v526_v14 = vld [vmem:[#allocation9 + $0x18] sm:$0xff] }
  0x96   :  { %v282_v58 = vrot.slane %v273_v53, %v171_v45  ;;  %v278_v60 = vrot.slane %v273_v53, %v167_v43  ;;  %v425_v4 = vld [vmem:[#allocation7 + $0x60] sm:$0xff]  ;;  %v528_v17 = vld [vmem:[#allocation9 + $0x28] sm:$0xff]  ;;  %v529_v19 = vld [vmem:[#allocation9 + $0x30] sm:$0xff] }
  0x97   :  { %993 = vmatpush3.bf16.msra.mxu1 %v992_v7  ;;  %v427_v7 = vld [vmem:[#allocation7 + $0x70] sm:$0xff]  ;;  %v523_v10 = vld [vmem:[#allocation9] sm:$0xff]  ;;  %v530_v20 = vld [vmem:[#allocation9 + $0x38] sm:$0xff] }
  0x98   :  { %748 = vmatpush1.msk.msra.mxu0 %vm179_vm0, %v161_v6  ;;  %995 = vmatprep.subr.bf16.mxu1 %v994_v9  ;;  %v1025_v6 = vpack.c.bf16 %v426_v5, %v425_v4  ;;  %v1031_v13 = vpack.c.bf16 %v524_v11, %v523_v10  ;;  %v527_v16 = vld [vmem:[#allocation9 + $0x20] sm:$0xff]  ;;  %v532_v23 = vld [vmem:[#allocation9 + $0x48] sm:$0xff]  ;;  %v533_v25 = vld [vmem:[#allocation9 + $0x50] sm:$0xff] }
  0x99   :  { %749 = vmatmul.mubr.msk.f32.vlgmr.msra.gmra.mrb[0].mxu0 %vm175_vm1, %v136_v8  ;;  %1006 = vmatprep.subr.bf16.mxu0 %v1252_v28  ;;  %v428_v8 = vld [vmem:[#allocation7 + $0x78] sm:$0xff]  ;;  %v531_v22 = vld [vmem:[#allocation9 + $0x40] sm:$0xff]  ;;  %v537_v43 = vld [vmem:[#allocation9 + $0x70] sm:$0xff] }
  0x9a   :  { %1008 = vmatpush3.bf16.msra.mxu0 %v1007_v29  ;;  %v1028_v9 = vpack.c.bf16 %v428_v8, %v427_v7  ;;  %877 = vmatprep.mubr.msk.f32.mxu0 %vm1253_vm2, %v1251_v0  ;;  %v534_v26 = vld [vmem:[#allocation9 + $0x58] sm:$0xff]  ;;  %v750_v30 = vld [vmem:[%s1515_s6] ss:$0 sm:$0xff]  ;;  %v618_v47 = vld [vmem:[#allocation10 + $0x8] sm:$0xff] }
  0x9b   :  { %997 = vmatpush3.bf16.msra.mxu1 %v996_v12  ;;  %1009 = vmatprep.subr.bf16.mxu0 %v1252_v28  ;;  %v525_v12 = vld [vmem:[#allocation9 + $0x10] sm:$0xff]  ;;  %v1046_v27 = vpack.c.bf16 %v534_v26, %v533_v25  ;;  %v752_v36 = vld [vmem:[%s1517_s8] ss:$0 sm:$0xff]  ;;  %v538_v44 = vld [vmem:[#allocation9 + $0x78] sm:$0xff] }
  0x9c   :  { %999 = vmatprep.subr.bf16.mxu1 %v998_v15  ;;  %v1034_v15 = vpack.c.bf16 %v526_v14, %v525_v12  ;;  %v535_v39 = vld [vmem:[#allocation9 + $0x60] sm:$0xff]  ;;  %v1052_v45 = vpack.c.bf16 %v538_v44, %v537_v43  ;;  %v630_v1 = vld [vmem:[#allocation10 + $0x68] sm:$0xff]  ;;  %v632_v12 = vld [vmem:[#allocation10 + $0x78] sm:$0xff] }
  0x9d   :  { %v754_v7 = vld [vmem:[%s1520_s11] ss:$0 sm:$0xff] }
  0x9e   :  { %1011 = vmatpush3.bf16.msra.mxu0 %v1010_v31  ;;  %v756_v14 = vld [vmem:[%s1523_s14] ss:$0 sm:$0xff] }
  0x9f   :  { %1001 = vmatpush3.bf16.msra.mxu1 %v1000_v18  ;;  %1012 = vmatprep.subr.bf16.mxu0 %v1252_v28  ;;  %v1037_v18 = vpack.c.bf16 %v528_v17, %v527_v16 }
  0xa0   :  { %1003 = vmatprep.subr.bf16.mxu1 %v1002_v21  ;;  %v1040_v21 = vpack.c.bf16 %v530_v20, %v529_v19  ;;  %v711_v19 = vand.u32 127, %v165_v41  ;;  %v757_v20 = vld [vmem:[%s1535_s23] ss:$0 sm:$0xff] }
  0xa2   :  { %1014 = vmatpush3.bf16.msra.mxu0 %v1013_v34  ;;  %v751_v34 = vld [vmem:[%s1516_s7] ss:$0 sm:$0xff]  ;;  %vm712_vm3 = vcmp.ge.s32.totalorder %v711_v19, 66  ;;  %vm713_vm4 = vcmp.lt.s32.totalorder %v711_v19, 69  ;;  %vm728_vm6 = vcmp.eq.s32.totalorder %v711_v19, 65  ;;  %vm726_vm7 = vcmp.eq.s32.totalorder %v711_v19, 64 }
  0xa3   :  { %1005 = vmatpush3.bf16.msra.mxu1 %v1004_v24  ;;  %1015 = vmatprep.subr.bf16.mxu0 %v1252_v28  ;;  %v1043_v24 = vpack.c.bf16 %v532_v23, %v531_v22  ;;  %vm1496_vm5 = vmand %vm712_vm3, %vm713_vm4 }
  0xa4   :  { %1030 = vmatprep.subr.bf16.mxu1 %v1252_v28 }
  0xa6   :  { %1017 = vmatpush3.bf16.msra.mxu0 %v1016_v37 }
  0xa7   :  { %1018 = vmatprep.subr.bf16.mxu0 %v1252_v28 }
  0xaa   :  { %1020 = vmatpush3.bf16.msra.mxu0 %v1019_v40  ;;  %v536_v40 = vld [vmem:[#allocation9 + $0x68] sm:$0xff] }
  0xab   :  { %1021 = vmatprep.subr.bf16.mxu0 %v1252_v28  ;;  %v1049_v42 = vpack.c.bf16 %v536_v40, %v535_v39 }
  0xae   :  { %1023 = vmatpush3.bf16.msra.mxu0 %v1022_v3  ;;  %v753_v3 = vld [vmem:[%s1519_s10] ss:$0 sm:$0xff] }
  0xaf   :  { %1024 = vmatprep.subr.bf16.mxu0 %v1252_v28 }
  0xb2   :  { %1026 = vmatpush3.bf16.msra.mxu0 %v1025_v6 }
  0xb3   :  { %1027 = vmatprep.subr.bf16.mxu0 %v1252_v28 }
  0xb6   :  { %1029 = vmatpush3.bf16.msra.mxu0 %v1028_v9  ;;  %v755_v9 = vld [vmem:[%s1521_s12] ss:$0 sm:$0xff] }
  0xb7   :  { %1054 = vmatprep.subr.bf16.mxu0 %v1252_v28 }
 0x16c   :  { %v252_v49 = vpop.f32.mrb[0].mxu0 }
 0x16d   :  { %v253_v50 = vadd.f32 %v252_v49, %v168_v46  ;;  %v254_v52 = vpop.f32.mrb[1].mxu0  ;;  %v617_v46 = vld [vmem:[#allocation10] sm:$0xff] }
 0x16e   :  { %v255_v54 = vadd.f32 %v254_v52, %v172_v48  ;;  %v619_v48 = vld [vmem:[#allocation10 + $0x10] sm:$0xff]  ;;  %v1055_v49 = vpack.c.bf16 %v618_v47, %v617_v46  ;;  %v622_v52 = vld [vmem:[#allocation10 + $0x28] sm:$0xff] }
 0x16f   :  { %v257_v56 = vmax.f32 %v253_v50, 0.0  ;;  %v620_v50 = vld [vmem:[#allocation10 + $0x18] sm:$0xff] }
 0x170   :  { %v258_v57 = vmax.f32 %v255_v54, 0.0  ;;  %v623_v54 = vld [vmem:[#allocation10 + $0x30] sm:$0xff] }
 0x171   :  { %v271_v59 = vmul.f32 %v264_v51, %v257_v56  ;;  %v1058_v51 = vpack.c.bf16 %v620_v50, %v619_v48 }
 0x172   :  { %v272_v61 = vmul.f32 %v268_v55, %v258_v57  ;;  %v624_v55 = vld [vmem:[#allocation10 + $0x38] sm:$0xff]  ;;  %v625_v57 = vld [vmem:[#allocation10 + $0x40] sm:$0xff] }
 0x173   :  { %v285_v63 = vadd.f32 %v278_v60, %v271_v59  ;;  %v1064_v56 = vpack.c.bf16 %v624_v55, %v623_v54  ;;  %v627_v60 = vld [vmem:[#allocation10 + $0x50] sm:$0xff] }
 0x174   :  { %v286_v62 = vadd.f32 %v282_v58, %v272_v61  ;;  %v626_v58 = vld [vmem:[#allocation10 + $0x48] sm:$0xff]  ;;  %v628_v61 = vld [vmem:[#allocation10 + $0x58] sm:$0xff] }
 0x175   :  { %v1067_v59 = vpack.c.bf16 %v626_v58, %v625_v57 }
 0x176   :  { %390 = vmatprep.mubr.f32.mxu1 %v286_v62  ;;  %v1070_v62 = vpack.c.bf16 %v628_v61, %v627_v60 }
 0x177   :  { %391 = vmatmul.mubr.f32.vlgmr.msra.gmra.mrb[0].mxu1 %v285_v63  ;;  %v629_v63 = vld [vmem:[#allocation10 + $0x60] sm:$0xff] }
 0x178   :  { %912 = vmatprep.mubr.msk.f32.mxu1 %vm1253_vm2, %v1251_v0  ;;  %1032 = vmatpush3.bf16.msra.mxu1 %v1031_v13  ;;  %v1073_v2 = vpack.c.bf16 %v630_v1, %v629_v63 }
 0x179   :  { %1033 = vmatprep.subr.bf16.mxu1 %v1252_v28 }
 0x17c   :  { %1035 = vmatpush3.bf16.msra.mxu1 %v1034_v15 }
 0x17d   :  { %1036 = vmatprep.subr.bf16.mxu1 %v1252_v28 }
 0x180   :  { %1038 = vmatpush3.bf16.msra.mxu1 %v1037_v18 }
 0x181   :  { %1039 = vmatprep.subr.bf16.mxu1 %v1252_v28 }
 0x184   :  { %1041 = vmatpush3.bf16.msra.mxu1 %v1040_v21 }
 0x185   :  { %1042 = vmatprep.subr.bf16.mxu1 %v1252_v28 }
 0x188   :  { %1044 = vmatpush3.bf16.msra.mxu1 %v1043_v24 }
 0x189   :  { %1045 = vmatprep.subr.bf16.mxu1 %v1252_v28 }
 0x18c   :  { %1047 = vmatpush3.bf16.msra.mxu1 %v1046_v27 }
 0x18d   :  { %1048 = vmatprep.subr.bf16.mxu1 %v1252_v28 }
 0x190   :  { %1050 = vmatpush3.bf16.msra.mxu1 %v1049_v42 }
 0x191   :  { %1051 = vmatprep.subr.bf16.mxu1 %v1252_v28 }
 0x194   :  { %1053 = vmatpush3.bf16.msra.mxu1 %v1052_v45 }
 0x24a   :  { %v791_v29 = vpop.f32.mrb[0].mxu1 }
 0x24b   :  { %v792_v31 = vpop.f32.mrb[1].mxu1 }
 0x24c   :  { %v793_v32 = vadd.f32 %v792_v31, %v791_v29 }
 0x24e   :  { %v393_v33 = vadd.f32 %v793_v32, %v750_v30 }
 0x250   :  { %v396_v35 = vmax.f32 %v393_v33, 0.0 }
 0x252   :  { %v404_v37 = vmul.f32 %v751_v34, %v396_v35 }
 0x254   :  { %v412_v38 = vadd.f32 %v752_v36, %v404_v37 }
 0x256   :  { %878 = vmatmul.mubr.f32.vlgmr.msra.gmra.mrb[2].mxu0 %v412_v38 }
 0x257   :  { %947 = vmatprep.mubr.msk.f32.mxu0 %vm1253_vm2, %v1251_v0  ;;  %1056 = vmatpush3.bf16.msra.mxu0 %v1055_v49  ;;  %v621_v0 = vld [vmem:[#allocation10 + $0x20] sm:$0xff] }
 0x258   :  { %1057 = vmatprep.subr.bf16.mxu0 %v1252_v28  ;;  %v1061_v53 = vpack.c.bf16 %v622_v52, %v621_v0 }
 0x25b   :  { %1059 = vmatpush3.bf16.msra.mxu0 %v1058_v51 }
 0x25c   :  { %1060 = vmatprep.subr.bf16.mxu0 %v1252_v28 }
 0x25f   :  { %1062 = vmatpush3.bf16.msra.mxu0 %v1061_v53 }
 0x260   :  { %1063 = vmatprep.subr.bf16.mxu0 %v1252_v28 }
 0x263   :  { %1065 = vmatpush3.bf16.msra.mxu0 %v1064_v56 }
 0x264   :  { %1066 = vmatprep.subr.bf16.mxu0 %v1252_v28 }
 0x267   :  { %1068 = vmatpush3.bf16.msra.mxu0 %v1067_v59 }
 0x268   :  { %1069 = vmatprep.subr.bf16.mxu0 %v1252_v28 }
 0x26b   :  { %1071 = vmatpush3.bf16.msra.mxu0 %v1070_v62 }
 0x26c   :  { %1072 = vmatprep.subr.bf16.mxu0 %v1252_v28 }
 0x26f   :  { %1074 = vmatpush3.bf16.msra.mxu0 %v1073_v2 }
 0x270   :  { %1075 = vmatprep.subr.bf16.mxu0 %v1252_v28  ;;  %v631_v28 = vld [vmem:[#allocation10 + $0x70] sm:$0xff] }
 0x271   :  { %v1076_v13 = vpack.c.bf16 %v632_v12, %v631_v28 }
 0x273   :  { %1077 = vmatpush3.bf16.msra.mxu0 %v1076_v13 }
 0x329   :  { %v502_v4 = vpop.f32.mrb[2].mxu0 }
 0x32a   :  { %v503_v5 = vadd.f32 %v753_v3, %v502_v4  ;;  %v879_v6 = vpop.f32.mrb[3].mxu0 }
 0x32c   :  { %v506_v8 = vmax.f32 %v503_v5, 0.0 }
 0x32e   :  { %v514_v10 = vmul.f32 %v754_v7, %v506_v8 }
 0x330   :  { %v522_v11 = vadd.f32 %v755_v9, %v514_v10 }
 0x332   :  { %913 = vmatmul.mubr.f32.vlgmr.msra.gmra.mrb[2].mxu1 %v522_v11 }
 0x405   :  { %v612_v15 = vpop.f32.mrb[2].mxu1 }
 0x406   :  { %v613_v16 = vadd.f32 %v756_v14, %v612_v15  ;;  %v914_v17 = vpop.f32.mrb[3].mxu1 }
 0x408   :  { %v616_v18 = vmax.f32 %v613_v16, 0.0 }
 0x40a   :  { %948 = vmatmul.mubr.f32.vlgmr.msra.gmra.mrb[4].mxu0 %v616_v18 }
 0x4dd   :  { %v706_v21 = vpop.f32.mrb[4].mxu0 }
 0x4de   :  { %v707_v23 = vadd.f32 %v757_v20, %v706_v21  ;;  %v949_v24 = vpop.f32.mrb[5].mxu0 }
 0x4e0   :  { %v715_v25 = vsel %vm1496_vm5, %v707_v23, -1e+30  ;;  %v758_v31 = vmul.f32 -1.442695, %v707_v23 }
 0x4e1   :  { %716 = vmax.xlane.f32.xlu0 %v715_v25 }
 0x56e   :  { %v717_v26 = vpop.xlane.xlu0 %716 }
 0x56f   :  { %v718_v27 = vsub.f32 %v707_v23, %v717_v26 }
 0x571   :  { %v719_v41 = vmul.f32 1.442695, %v718_v27 }
 0x573   :  { %1091 = vpow2.f32 %v719_v41 }
 0x574   :  { %1093 = vpow2.f32 %v758_v31 }
 0x57d   :  { %v1092_v29 = vpop.eup %1091 }
 0x57e   :  { %v721_v30 = vsel %vm1496_vm5, %v1092_v29, 0.0  ;;  %v1094_v32 = vpop.eup %1093 }
 0x57f   :  { %722 = vadd.xlane.f32.xlu0 %v721_v30  ;;  %v732_v33 = vadd.f32 1.0, %v1094_v32 }
 0x60c   :  { %v723_v34 = vpop.xlane.xlu0 %722 }
 0x60d   :  { %1095 = vrcp.f32 %v723_v34 }
 0x60e   :  { %1097 = vrcp.f32 %v732_v33 }
 0x60f   :  { %1099 = vtanh.f32 %v707_v23 }
 0x617   :  { %v1096_v35 = vpop.eup %1095 }
 0x618   :  { %v725_v36 = vmul.f32 %v1096_v35, %v721_v30  ;;  %v1098_v37 = vpop.eup %1097 }
 0x619   :  { %v1100_v39 = vpop.eup %1099 }
 0x61a   :  { %v735_v38 = vsel %vm1496_vm5, %v725_v36, %v522_v11 }
 0x61b   :  { %v736_v40 = vsel %vm728_vm6, %v1098_v37, %v735_v38 }
 0x61c   :  { %v737_v42 = vsel %vm726_vm7, %v1100_v39, %v736_v40 }
 0x61d   :  { %738 = vst [vmem:[%s1538_s9] sm:$0xff] %v737_v42 }
 0x61e   :  { %743 = vsyncpa [#allocation3], 1 }
 0x61f   :  { %744 = vsyncpa [#allocation5], 1 }
 0x620   :  { %745 = vsyncpa [#allocation8], 1 }
 0x621   :  { %746 = vsyncpa [#allocation11], 1 }

</bundles_post_ra>
